<compile_context>
chip_gen: v7x
topology: tpu7x:2x2x1
jax: 0.10.0
libtpu: 0.0.40
codegen_flags: <defaults>
</compile_context>

<pallas_src>
import functools

import jax
import jax.numpy as jnp
from jax import lax
from jax.experimental import pallas as pl
from jax.experimental.pallas import tpu as pltpu

BN_EPS = 1e-5
LEAKY_SLOPE = 0.2
LANE = 128
VMEM_LIMIT = 32 * 1024 * 1024  # <= scoped/physical VMEM on v5e / v6e / v7x


def _round_up(x, m):
    return (x + m - 1) // m * m


def _pick_tm(M, Kp, Cp):
    """Largest M-tile (multiple of 8, capped at 1024) whose double-buffered
    working set fits comfortably inside the scoped-VMEM budget."""
    budget = 12 * 1024 * 1024                    # leave headroom under 32 MiB
    fixed = Kp * Cp * 2 + 4 * Cp * 4             # resident W (bf16) + scale/bias
    per_row = 2 * (Kp * 2) + 2 * (Cp * 4)        # 2x-buffered P (bf16) + out (f32)
    tm = (budget - fixed) // per_row
    tm = max(8, min(1024, int(tm)))
    tm = (tm // 8) * 8
    return min(tm, _round_up(M, 8))


def _stats_kernel(p_ref, w_ref, sum_ref, sq_ref):
    """Pass A: accumulate per-channel sum / sum-of-squares of Y = P @ W."""
    @pl.when(pl.program_id(0) == 0)
    def _init():
        sum_ref[...] = jnp.zeros_like(sum_ref)
        sq_ref[...] = jnp.zeros_like(sq_ref)

    y = jnp.dot(p_ref[...], w_ref[...], preferred_element_type=jnp.float32)
    sum_ref[...] += jnp.sum(y, axis=0, keepdims=True)
    sq_ref[...] += jnp.sum(y * y, axis=0, keepdims=True)


def _normalize_kernel(p_ref, w_ref, scale_ref, bias_ref, o_ref):
    """Pass B: Y = P @ W, fused folded-BN affine + LeakyReLU(0.2)."""
    y = jnp.dot(p_ref[...], w_ref[...], preferred_element_type=jnp.float32)
    yn = y * scale_ref[...] + bias_ref[...]
    o_ref[...] = jnp.where(yn >= 0.0, yn, LEAKY_SLOPE * yn).astype(o_ref.dtype)


def cnn_block_forward(x, weight, gamma, beta, stride):
    """x: (N, C_in, H, W) f32, weight: (C_out, C_in, 4, 4) f32."""
    N, Cin, H, W = x.shape
    Cout = weight.shape[0]
    KH = KW = 4

    # Reflect padding = 1 on H and W (PyTorch padding_mode='reflect'); cast to
    # bf16 once, before im2col, so the glue intermediates are half-width.
    xp = jnp.pad(x, ((0, 0), (0, 0), (1, 1), (1, 1)), mode="reflect")
    xp = xp.astype(jnp.bfloat16)
    Hp, Wp = H + 2, W + 2
    Ho = (Hp - KH) // stride + 1
    Wo = (Wp - KW) // stride + 1

    # im2col (layout glue; all hot-path compute stays inside the Pallas kernels)
    cols = []
    for ki in range(KH):
        for kj in range(KW):
            cols.append(
                xp[:, :,
                   ki:ki + stride * (Ho - 1) + 1:stride,
                   kj:kj + stride * (Wo - 1) + 1:stride])
    P = jnp.stack(cols, axis=-1)                               # (N,Cin,Ho,Wo,16)
    P = jnp.transpose(P, (0, 2, 3, 1, 4)).reshape(N * Ho * Wo, Cin * KH * KW)

    M, K = P.shape
    Kp = _round_up(K, LANE)          # lane-dense contraction dim
    Cp = _round_up(Cout, LANE)       # lane-dense output channels

    tm = _pick_tm(M, Kp, Cp)
    Mp = _round_up(M, tm)

    # Zero-pad (padded rows / channels contribute 0 to stats, sliced off later).
    P_p = jnp.pad(P, ((0, Mp - M), (0, Kp - K)))                # bf16
    Wm = weight.reshape(Cout, K).T                              # (K, Cout)
    Wm = jnp.pad(Wm, ((0, Kp - K), (0, Cp - Cout))).astype(jnp.bfloat16)

    grid = (Mp // tm,)

    # ---- Pass A: global per-channel batch statistics -------------------------
    sum_y, sumsq_y = pl.pallas_call(
        _stats_kernel,
        out_shape=(jax.ShapeDtypeStruct((1, Cp), jnp.float32),
                   jax.ShapeDtypeStruct((1, Cp), jnp.float32)),
        grid_spec=pltpu.PrefetchScalarGridSpec(
            num_scalar_prefetch=0, grid=grid,
            in_specs=[pl.BlockSpec((tm, Kp), lambda i: (i, 0)),
                      pl.BlockSpec((Kp, Cp), lambda i: (0, 0))],
            out_specs=[pl.BlockSpec((1, Cp), lambda i: (0, 0)),
                       pl.BlockSpec((1, Cp), lambda i: (0, 0))]),
        compiler_params=pltpu.CompilerParams(
            dimension_semantics=("arbitrary",),
            vmem_limit_bytes=VMEM_LIMIT),
    )(P_p, Wm)

    # Fold BN (training-mode, biased batch stats) into per-channel scale/bias.
    mean = sum_y[0] / M
    var = jnp.maximum(sumsq_y[0] / M - mean * mean, 0.0)
    inv_std = lax.rsqrt(var + BN_EPS)
    gamma_p = jnp.pad(gamma.astype(jnp.float32), (0, Cp - Cout))
    beta_p = jnp.pad(beta.astype(jnp.float32), (0, Cp - Cout))
    scale = (gamma_p * inv_std).reshape(1, Cp)
    bias = (beta_p - mean * gamma_p * inv_std).reshape(1, Cp)

    # ---- Pass B: matmul + folded BN + LeakyReLU (parallel over M tiles) ------
    out_flat = pl.pallas_call(
        _normalize_kernel,
        out_shape=jax.ShapeDtypeStruct((Mp, Cp), jnp.float32),
        grid_spec=pltpu.PrefetchScalarGridSpec(
            num_scalar_prefetch=0, grid=grid,
            in_specs=[pl.BlockSpec((tm, Kp), lambda i: (i, 0)),
                      pl.BlockSpec((Kp, Cp), lambda i: (0, 0)),
                      pl.BlockSpec((1, Cp), lambda i: (0, 0)),
                      pl.BlockSpec((1, Cp), lambda i: (0, 0))],
            out_specs=pl.BlockSpec((tm, Cp), lambda i: (i, 0))),
        compiler_params=pltpu.CompilerParams(
            dimension_semantics=("parallel",),
            vmem_limit_bytes=VMEM_LIMIT),
    )(P_p, Wm, scale, bias)

    # Strip padding, back to NCHW (kept for PyTorch-module output fidelity;
    # a fused consumer could take the (M, C) / NHWC layout directly).
    out = out_flat[:M, :Cout].reshape(N, Ho, Wo, Cout).transpose(0, 3, 1, 2)
    return out


def reference_forward(x, weight, gamma, beta, stride):
    """Pure-JAX reference matching PyTorch training-mode forward."""
    xp = jnp.pad(x, ((0, 0), (0, 0), (1, 1), (1, 1)), mode="reflect")
    y = lax.conv_general_dilated(
        xp, weight, window_strides=(stride, stride), padding="VALID",
        dimension_numbers=("NCHW", "OIHW", "NCHW"))
    mean = y.mean(axis=(0, 2, 3), keepdims=True)
    var = y.var(axis=(0, 2, 3), keepdims=True)  # biased, like BN training fwd
    yn = (y - mean) * lax.rsqrt(var + BN_EPS)
    yn = yn * gamma.reshape(1, -1, 1, 1) + beta.reshape(1, -1, 1, 1)
    return jnp.where(yn >= 0, yn, LEAKY_SLOPE * yn)


if __name__ == "__main__":
    # Small, module-consistent shapes: batch=2, in_channels=4, out_channels=8,
    # spatial 16x16, stride=2 (typical discriminator CNNBlock setting).
    N, Cin, Cout, H, W, stride = 2, 4, 8, 16, 16, 2

    key = jax.random.PRNGKey(0)
    kx, kw, kg, kb = jax.random.split(key, 4)

    x = jax.random.normal(kx, (N, Cin, H, W), dtype=jnp.float32)
    weight = 0.1 * jax.random.normal(kw, (Cout, Cin, 4, 4), dtype=jnp.float32)
    gamma = 1.0 + 0.1 * jax.random.normal(kg, (Cout,), dtype=jnp.float32)
    beta = 0.1 * jax.random.normal(kb, (Cout,), dtype=jnp.float32)

    fwd = jax.jit(functools.partial(cnn_block_forward, stride=stride))
    out = jax.block_until_ready(fwd(x, weight, gamma, beta))

    Ho = (H + 2 - 4) // stride + 1
    assert out.shape == (N, Cout, Ho, Ho)

    # Strict check: reference with the same bf16 input quantization as the
    # kernel's MXU path (isolates kernel/tiling/BN correctness).
    xq = x.astype(jnp.bfloat16).astype(jnp.float32)
    wq = weight.astype(jnp.bfloat16).astype(jnp.float32)
    ref_q = reference_forward(xq, wq, gamma, beta, stride)
    assert jnp.allclose(out, ref_q, atol=2e-3, rtol=2e-3), \
        "mismatch vs bf16-quantized reference"

    # Loose check vs the full-f32 PyTorch-semantics reference; the only
    # difference is bf16 rounding of the streamed matmul operands.
    ref = reference_forward(x, weight, gamma, beta, stride)
    assert jnp.allclose(out, ref, atol=5e-2, rtol=5e-2), \
        "mismatch vs f32 reference"

    print("KERNEL_OK")
</pallas_src>

<mosaic_0001>
module attributes {stable_mosaic.version = 11 : i64} {
  func.func @_stats_kernel(%arg0: i32, %arg1: memref<128x128xbf16, #tpu.memory_space<vmem>>, %arg2: memref<128x128xbf16, #tpu.memory_space<vmem>>, %arg3: memref<1x128xf32, #tpu.memory_space<vmem>>, %arg4: memref<1x128xf32, #tpu.memory_space<vmem>>) attributes {dimension_semantics = [#tpu.dimension_semantics<arbitrary>], iteration_bounds = array<i64: 1>, scalar_prefetch = 0 : i64, scratch_operands = 0 : i64, tpu.core_type = #tpu.core_type<tc>, window_params = [{transform_indices = @transform_0, window_bounds = array<i64: 128, 128>}, {pipeline_mode = #tpu.pipeline_mode<synchronous>, transform_indices = @transform_1, window_bounds = array<i64: 128, 128>}, {pipeline_mode = #tpu.pipeline_mode<synchronous>, transform_indices = @transform_2, window_bounds = array<i64: 1, 128>}, {pipeline_mode = #tpu.pipeline_mode<synchronous>, transform_indices = @transform_3, window_bounds = array<i64: 1, 128>}]} {
    %c0_i32 = arith.constant 0 : i32
    %0 = arith.cmpi eq, %arg0, %c0_i32 : i32
    %1 = arith.extui %0 : i1 to i32
    %c0_i32_0 = arith.constant 0 : i32
    %2 = arith.cmpi ne, %1, %c0_i32_0 : i32
    scf.if %2 {
      %cst_14 = arith.constant 0.000000e+00 : f32
      %17 = vector.broadcast %cst_14 : f32 to vector<1x128xf32>
      %c0_15 = arith.constant 0 : index
      %c0_16 = arith.constant 0 : index
      %18 = vector.load %arg3[%c0_15, %c0_16] : memref<1x128xf32, #tpu.memory_space<vmem>>, vector<1x128xf32>
      tpu.vector_store %arg3[%c0_15, %c0_16], %17 {strides = array<i32>} : memref<1x128xf32, #tpu.memory_space<vmem>>, vector<1x128xf32>,
      %cst_17 = arith.constant 0.000000e+00 : f32
      %19 = vector.broadcast %cst_17 : f32 to vector<1x128xf32>
      %c0_18 = arith.constant 0 : index
      %c0_19 = arith.constant 0 : index
      %20 = vector.load %arg4[%c0_18, %c0_19] : memref<1x128xf32, #tpu.memory_space<vmem>>, vector<1x128xf32>
      tpu.vector_store %arg4[%c0_18, %c0_19], %19 {strides = array<i32>} : memref<1x128xf32, #tpu.memory_space<vmem>>, vector<1x128xf32>,
    } else {
    }
    %c0 = arith.constant 0 : index
    %c0_1 = arith.constant 0 : index
    %3 = vector.load %arg1[%c0, %c0_1] : memref<128x128xbf16, #tpu.memory_space<vmem>>, vector<128x128xbf16>
    %c0_2 = arith.constant 0 : index
    %c0_3 = arith.constant 0 : index
    %4 = vector.load %arg2[%c0_2, %c0_3] : memref<128x128xbf16, #tpu.memory_space<vmem>>, vector<128x128xbf16>
    %cst = arith.constant dense<0.000000e+00> : vector<128x128xf32>
    %5 = tpu.matmul %3, %4, %cst {dimension_numbers = #tpu.dot_dimension_numbers<[1], [0], [0], [1], [0, 0, 1, 1], [], []>} : vector<128x128xbf16>, vector<128x128xbf16>, vector<128x128xf32> -> vector<128x128xf32>
    %c0_4 = arith.constant 0 : index
    %c0_5 = arith.constant 0 : index
    %6 = vector.load %arg3[%c0_4, %c0_5] : memref<1x128xf32, #tpu.memory_space<vmem>>, vector<1x128xf32>
    %cst_6 = arith.constant dense<0.000000e+00> : vector<128xf32>
    %7 = vector.multi_reduction <add>, %5, %cst_6 [0] : vector<128x128xf32> to vector<128xf32>
    %8 = vector.shape_cast %7 : vector<128xf32> to vector<1x128xf32>
    %9 = arith.addf %6, %8 : vector<1x128xf32>
    %c0_7 = arith.constant 0 : index
    %c0_8 = arith.constant 0 : index
    %10 = vector.load %arg3[%c0_7, %c0_8] : memref<1x128xf32, #tpu.memory_space<vmem>>, vector<1x128xf32>
    tpu.vector_store %arg3[%c0_7, %c0_8], %9 {strides = array<i32>} : memref<1x128xf32, #tpu.memory_space<vmem>>, vector<1x128xf32>,
    %c0_9 = arith.constant 0 : index
    %c0_10 = arith.constant 0 : index
    %11 = vector.load %arg4[%c0_9, %c0_10] : memref<1x128xf32, #tpu.memory_space<vmem>>, vector<1x128xf32>
    %12 = arith.mulf %5, %5 : vector<128x128xf32>
    %cst_11 = arith.constant dense<0.000000e+00> : vector<128xf32>
    %13 = vector.multi_reduction <add>, %12, %cst_11 [0] : vector<128x128xf32> to vector<128xf32>
    %14 = vector.shape_cast %13 : vector<128xf32> to vector<1x128xf32>
    %15 = arith.addf %11, %14 : vector<1x128xf32>
    %c0_12 = arith.constant 0 : index
    %c0_13 = arith.constant 0 : index
    %16 = vector.load %arg4[%c0_12, %c0_13] : memref<1x128xf32, #tpu.memory_space<vmem>>, vector<1x128xf32>
    tpu.vector_store %arg4[%c0_12, %c0_13], %15 {strides = array<i32>} : memref<1x128xf32, #tpu.memory_space<vmem>>, vector<1x128xf32>,
    return
  }
  func.func @transform_0(%arg0: i32) -> (i32, i32) {
    %c0_i32 = arith.constant 0 : i32
    %c0_i32_0 = arith.constant 0 : i32
    return %arg0, %c0_i32 : i32, i32
  }
  func.func @transform_1(%arg0: i32) -> (i32, i32) {
    %c0_i32 = arith.constant 0 : i32
    %c0_i32_0 = arith.constant 0 : i32
    %c0_i32_1 = arith.constant 0 : i32
    return %c0_i32, %c0_i32_0 : i32, i32
  }
  func.func @transform_2(%arg0: i32) -> (i32, i32) {
    %c0_i32 = arith.constant 0 : i32
    %c0_i32_0 = arith.constant 0 : i32
    %c0_i32_1 = arith.constant 0 : i32
    return %c0_i32, %c0_i32_0 : i32, i32
  }
  func.func @transform_3(%arg0: i32) -> (i32, i32) {
    %c0_i32 = arith.constant 0 : i32
    %c0_i32_0 = arith.constant 0 : i32
    %c0_i32_1 = arith.constant 0 : i32
    return %c0_i32, %c0_i32_0 : i32, i32
  }
}

module attributes {stable_mosaic.version = 11 : i64} {
  func.func @_normalize_kernel(%arg0: i32, %arg1: memref<128x128xbf16, #tpu.memory_space<vmem>>, %arg2: memref<128x128xbf16, #tpu.memory_space<vmem>>, %arg3: memref<1x128xf32, #tpu.memory_space<vmem>>, %arg4: memref<1x128xf32, #tpu.memory_space<vmem>>, %arg5: memref<128x128xf32, #tpu.memory_space<vmem>>) attributes {dimension_semantics = [#tpu.dimension_semantics<parallel>], iteration_bounds = array<i64: 1>, scalar_prefetch = 0 : i64, scratch_operands = 0 : i64, tpu.core_type = #tpu.core_type<tc>, window_params = [{transform_indices = @transform_0, window_bounds = array<i64: 128, 128>}, {pipeline_mode = #tpu.pipeline_mode<synchronous>, transform_indices = @transform_1, window_bounds = array<i64: 128, 128>}, {pipeline_mode = #tpu.pipeline_mode<synchronous>, transform_indices = @transform_2, window_bounds = array<i64: 1, 128>}, {pipeline_mode = #tpu.pipeline_mode<synchronous>, transform_indices = @transform_3, window_bounds = array<i64: 1, 128>}, {transform_indices = @transform_4, window_bounds = array<i64: 128, 128>}]} {
    %c0 = arith.constant 0 : index
    %c0_0 = arith.constant 0 : index
    %0 = vector.load %arg1[%c0, %c0_0] : memref<128x128xbf16, #tpu.memory_space<vmem>>, vector<128x128xbf16>
    %c0_1 = arith.constant 0 : index
    %c0_2 = arith.constant 0 : index
    %1 = vector.load %arg2[%c0_1, %c0_2] : memref<128x128xbf16, #tpu.memory_space<vmem>>, vector<128x128xbf16>
    %cst = arith.constant dense<0.000000e+00> : vector<128x128xf32>
    %2 = tpu.matmul %0, %1, %cst {dimension_numbers = #tpu.dot_dimension_numbers<[1], [0], [0], [1], [0, 0, 1, 1], [], []>} : vector<128x128xbf16>, vector<128x128xbf16>, vector<128x128xf32> -> vector<128x128xf32>
    %c0_3 = arith.constant 0 : index
    %c0_4 = arith.constant 0 : index
    %3 = vector.load %arg3[%c0_3, %c0_4] : memref<1x128xf32, #tpu.memory_space<vmem>>, vector<1x128xf32>
    %4 = vector.broadcast %3 : vector<1x128xf32> to vector<128x128xf32>
    %5 = arith.mulf %2, %4 : vector<128x128xf32>
    %c0_5 = arith.constant 0 : index
    %c0_6 = arith.constant 0 : index
    %6 = vector.load %arg4[%c0_5, %c0_6] : memref<1x128xf32, #tpu.memory_space<vmem>>, vector<1x128xf32>
    %7 = vector.broadcast %6 : vector<1x128xf32> to vector<128x128xf32>
    %8 = arith.addf %5, %7 : vector<128x128xf32>
    %cst_7 = arith.constant 0.000000e+00 : f32
    %9 = vector.broadcast %cst_7 : f32 to vector<128x128xf32>
    %10 = arith.cmpf oge, %8, %9 : vector<128x128xf32>
    %cst_8 = arith.constant 2.000000e-01 : f32
    %11 = vector.broadcast %cst_8 : f32 to vector<128x128xf32>
    %12 = arith.mulf %11, %8 : vector<128x128xf32>
    %13 = arith.select %10, %8, %12 : vector<128x128xi1>, vector<128x128xf32>
    %c0_9 = arith.constant 0 : index
    %c0_10 = arith.constant 0 : index
    %14 = vector.load %arg5[%c0_9, %c0_10] : memref<128x128xf32, #tpu.memory_space<vmem>>, vector<128x128xf32>
    tpu.vector_store %arg5[%c0_9, %c0_10], %13 {strides = array<i32>} : memref<128x128xf32, #tpu.memory_space<vmem>>, vector<128x128xf32>,
    return
  }
  func.func @transform_0(%arg0: i32) -> (i32, i32) {
    %c0_i32 = arith.constant 0 : i32
    %c0_i32_0 = arith.constant 0 : i32
    return %arg0, %c0_i32 : i32, i32
  }
  func.func @transform_1(%arg0: i32) -> (i32, i32) {
    %c0_i32 = arith.constant 0 : i32
    %c0_i32_0 = arith.constant 0 : i32
    %c0_i32_1 = arith.constant 0 : i32
    return %c0_i32, %c0_i32_0 : i32, i32
  }
  func.func @transform_2(%arg0: i32) -> (i32, i32) {
    %c0_i32 = arith.constant 0 : i32
    %c0_i32_0 = arith.constant 0 : i32
    %c0_i32_1 = arith.constant 0 : i32
    return %c0_i32, %c0_i32_0 : i32, i32
  }
  func.func @transform_3(%arg0: i32) -> (i32, i32) {
    %c0_i32 = arith.constant 0 : i32
    %c0_i32_0 = arith.constant 0 : i32
    %c0_i32_1 = arith.constant 0 : i32
    return %c0_i32, %c0_i32_0 : i32, i32
  }
  func.func @transform_4(%arg0: i32) -> (i32, i32) {
    %c0_i32 = arith.constant 0 : i32
    %c0_i32_0 = arith.constant 0 : i32
    return %arg0, %c0_i32 : i32, i32
  }
}

</mosaic_0001>

<bundles_post_ra>
// kernel: cnn_block_forward.2
= control target key start
LH: loop header
LB: loop body
LE: loop exit
PB: predicated region body
PF: predicated region fallthrough
CT: control target
= control target key end

     0   :  { %v414_v16 = vmov 0.0   ;;  %s501_s1 = inlined_call_operand.vmem [shape: bf16[128,128], index: 1, kind: input, shape index: {}]   ;;  %s502_s0 = inlined_call_operand.vmem [shape: bf16[128,128], index: 0, kind: input, shape index: {}]   ;;  %s503_s2 = inlined_call_operand.vmem [shape: f32[1,128], index: 2, kind: output, shape index: {0}]   ;;  %s504_s3 = inlined_call_operand.vmem [shape: f32[1,128], index: 3, kind: output, shape index: {1}]  }
   0x1   :  { %v398_v0 = vld [vmem:[%s501_s1] sm:$0xff]   ;;  %v399_v1 = vld [vmem:[%s501_s1 + $0x8] sm:$0xff]   ;;  %v400_v2 = vld [vmem:[%s501_s1 + $0x10] sm:$0xff]   ;;  %18 = vst [vmem:[%s503_s2] sm:$0x1] %v414_v16 }
   0x2   :  { %349 = vmatprep.subr.bf16.mxu0 %v398_v0  ;;  %381 = vmatprep.subr.bf16.mxu1 %v398_v0  ;;  %v401_v3 = vld [vmem:[%s501_s1 + $0x18] sm:$0xff]   ;;  %v406_v4 = vld [vmem:[%s502_s0] sm:$0xff]   ;;  %v403_v7 = vld [vmem:[%s501_s1 + $0x28] sm:$0xff]   ;;  %19 = vst [vmem:[%s504_s3] sm:$0x1] %v414_v16 }
   0x3   :  { %350 = vmatpush3.bf16.msra.mxu0 %v398_v0  ;;  %389 = vmatpush3.bf16.msra.mxu1 %v398_v0  ;;  %v402_v5 = vld [vmem:[%s501_s1 + $0x20] sm:$0xff]   ;;  %v404_v8 = vld [vmem:[%s501_s1 + $0x30] sm:$0xff]   ;;  %v405_v9 = vld [vmem:[%s501_s1 + $0x38] sm:$0xff]  }
   0x4   :  { %351 = vmatprep.subr.bf16.mxu0 %v399_v1  ;;  %382 = vmatprep.subr.bf16.mxu1 %v399_v1  ;;  %v410_v6 = vld [vmem:[%s502_s0 + $0x20] sm:$0xff]   ;;  %v407_v10 = vld [vmem:[%s502_s0 + $0x8] sm:$0xff]   ;;  %v408_v12 = vld [vmem:[%s502_s0 + $0x10] sm:$0xff]  }
   0x5   :  { %365 = vmatprep.mubr.bf16.mxu0 %v406_v4  ;;  %373 = vmatprep.mubr.bf16.mxu1 %v410_v6  ;;  %v411_v11 = vld [vmem:[%s502_s0 + $0x28] sm:$0xff]   ;;  %v412_v13 = vld [vmem:[%s502_s0 + $0x30] sm:$0xff]   ;;  %v409_v14 = vld [vmem:[%s502_s0 + $0x18] sm:$0xff]  }
   0x6   :  { %v413_v15 = vld [vmem:[%s502_s0 + $0x38] sm:$0xff]  }
   0x7   :  { %352 = vmatpush3.bf16.msra.mxu0 %v399_v1  ;;  %390 = vmatpush3.bf16.msra.mxu1 %v399_v1 }
   0x8   :  { %353 = vmatprep.subr.bf16.mxu0 %v400_v2  ;;  %383 = vmatprep.subr.bf16.mxu1 %v400_v2 }
   0xb   :  { %354 = vmatpush3.bf16.msra.mxu0 %v400_v2  ;;  %391 = vmatpush3.bf16.msra.mxu1 %v400_v2 }
   0xc   :  { %355 = vmatprep.subr.bf16.mxu0 %v401_v3  ;;  %384 = vmatprep.subr.bf16.mxu1 %v401_v3 }
   0xf   :  { %356 = vmatpush3.bf16.msra.mxu0 %v401_v3  ;;  %392 = vmatpush3.bf16.msra.mxu1 %v401_v3 }
  0x10   :  { %357 = vmatprep.subr.bf16.mxu0 %v402_v5  ;;  %385 = vmatprep.subr.bf16.mxu1 %v402_v5 }
  0x13   :  { %358 = vmatpush3.bf16.msra.mxu0 %v402_v5  ;;  %393 = vmatpush3.bf16.msra.mxu1 %v402_v5 }
  0x14   :  { %359 = vmatprep.subr.bf16.mxu0 %v403_v7  ;;  %386 = vmatprep.subr.bf16.mxu1 %v403_v7 }
  0x17   :  { %360 = vmatpush3.bf16.msra.mxu0 %v403_v7  ;;  %394 = vmatpush3.bf16.msra.mxu1 %v403_v7 }
  0x18   :  { %361 = vmatprep.subr.bf16.mxu0 %v404_v8  ;;  %387 = vmatprep.subr.bf16.mxu1 %v404_v8 }
  0x1b   :  { %362 = vmatpush3.bf16.msra.mxu0 %v404_v8  ;;  %395 = vmatpush3.bf16.msra.mxu1 %v404_v8 }
  0x1c   :  { %363 = vmatprep.subr.bf16.mxu0 %v405_v9  ;;  %388 = vmatprep.subr.bf16.mxu1 %v405_v9 }
  0x1f   :  { %364 = vmatpush3.bf16.msra.mxu0 %v405_v9  ;;  %396 = vmatpush3.bf16.msra.mxu1 %v405_v9 }
  0x22   :  { %366 = vmatmul.mubr.bf16.vlgmr.msra.gmra.mrb[0].mxu0 %v407_v10  ;;  %374 = vmatmul.mubr.bf16.vlgmr.msra.gmra.mrb[0].mxu1 %v411_v11 }
  0x23   :  { %369 = vmatprep.mubr.bf16.mxu0 %v408_v12  ;;  %377 = vmatprep.mubr.bf16.mxu1 %v412_v13 }
  0x2a   :  { %370 = vmatmul.mubr.bf16.gmra.mrb[4].mxu0 %v409_v14  ;;  %378 = vmatmul.mubr.bf16.gmra.mrb[4].mxu1 %v413_v15 }
  0xf5   :  { %v367_v17 = vpop.f32.mrb[0].mxu0  ;;  %v375_v18 = vpop.f32.mrb[0].mxu1 }
  0xf6   :  { %v182_v19 = vpop.f32.mrb[1].mxu0  ;;  %v214_v20 = vpop.f32.mrb[1].mxu1  ;;  %v272_v28 = vmul.f32 %v367_v17, %v367_v17  ;;  %v280_v60 = vmul.f32 %v375_v18, %v375_v18 }
  0xf7   :  { %v368_v21 = vpop.f32.mrb[2].mxu0  ;;  %v376_v22 = vpop.f32.mrb[2].mxu1  ;;  %v270_v25 = vmul.f32 %v182_v19, %v182_v19  ;;  %v278_v54 = vmul.f32 %v214_v20, %v214_v20 }
  0xf8   :  { %v185_v23 = vpop.f32.mrb[3].mxu0  ;;  %v217_v24 = vpop.f32.mrb[3].mxu1  ;;  %v273_v31 = vmul.f32 %v368_v21, %v368_v21  ;;  %v281_v63 = vmul.f32 %v376_v22, %v376_v22 }
  0xf9   :  { %v246_v26 = vadd.f32 %v185_v23, %v182_v19  ;;  %v271_v27 = vmul.f32 %v185_v23, %v185_v23  ;;  %v279_v59 = vmul.f32 %v217_v24, %v217_v24 }
  0xfb   :  { %v247_v29 = vadd.f32 %v367_v17, %v246_v26  ;;  %v286_v30 = vadd.f32 %v271_v27, %v270_v25  ;;  %v269_v27 = vld [vmem:[%s504_s3] sm:$0x1] }
  0xfd   :  { %v287_v32 = vadd.f32 %v286_v30, %v272_v28  ;;  %v371_v33 = vpop.f32.mrb[4].mxu0  ;;  %v248_v34 = vadd.f32 %v368_v21, %v247_v29  ;;  %v379_v35 = vpop.f32.mrb[4].mxu1 }
  0xfe   :  { %v198_v36 = vpop.f32.mrb[5].mxu0  ;;  %v230_v37 = vpop.f32.mrb[5].mxu1  ;;  %v276_v48 = vmul.f32 %v371_v33, %v371_v33  ;;  %v284_v8 = vmul.f32 %v379_v35, %v379_v35 }
  0xff   :  { %v249_v38 = vadd.f32 %v248_v34, %v198_v36  ;;  %v274_v39 = vmul.f32 %v198_v36, %v198_v36  ;;  %v288_v40 = vadd.f32 %v287_v32, %v273_v31  ;;  %v372_v41 = vpop.f32.mrb[6].mxu0  ;;  %v380_v42 = vpop.f32.mrb[6].mxu1  ;;  %v282_v2 = vmul.f32 %v230_v37, %v230_v37 }
 0x100   :  { %v201_v43 = vpop.f32.mrb[7].mxu0  ;;  %v233_v44 = vpop.f32.mrb[7].mxu1  ;;  %v277_v51 = vmul.f32 %v372_v41, %v372_v41  ;;  %v285_v11 = vmul.f32 %v380_v42, %v380_v42 }
 0x101   :  { %v289_v45 = vadd.f32 %v288_v40, %v274_v39  ;;  %v250_v46 = vadd.f32 %v249_v38, %v201_v43  ;;  %v275_v47 = vmul.f32 %v201_v43, %v201_v43  ;;  %v283_v7 = vmul.f32 %v233_v44, %v233_v44 }
 0x103   :  { %v251_v49 = vadd.f32 %v371_v33, %v250_v46  ;;  %v290_v50 = vadd.f32 %v289_v45, %v275_v47 }
 0x105   :  { %v291_v52 = vadd.f32 %v290_v50, %v276_v48  ;;  %v252_v53 = vadd.f32 %v372_v41, %v251_v49 }
 0x107   :  { %v253_v55 = vadd.f32 %v252_v53, %v214_v20  ;;  %v292_v56 = vadd.f32 %v291_v52, %v277_v51 }
 0x109   :  { %v293_v57 = vadd.f32 %v292_v56, %v278_v54  ;;  %v254_v58 = vadd.f32 %v253_v55, %v217_v24  ;;  %v245_v24 = vld [vmem:[%s503_s2] sm:$0x1] }
 0x10b   :  { %v255_v61 = vadd.f32 %v375_v18, %v254_v58  ;;  %v294_v62 = vadd.f32 %v293_v57, %v279_v59 }
 0x10d   :  { %v295_v0 = vadd.f32 %v294_v62, %v280_v60  ;;  %v256_v1 = vadd.f32 %v376_v22, %v255_v61 }
 0x10f   :  { %v257_v3 = vadd.f32 %v256_v1, %v230_v37  ;;  %v296_v4 = vadd.f32 %v295_v0, %v281_v63 }
 0x111   :  { %v297_v5 = vadd.f32 %v296_v4, %v282_v2  ;;  %v258_v6 = vadd.f32 %v257_v3, %v233_v44 }
 0x113   :  { %v259_v9 = vadd.f32 %v379_v35, %v258_v6  ;;  %v298_v10 = vadd.f32 %v297_v5, %v283_v7 }
 0x115   :  { %v260_v12 = vadd.f32 %v380_v42, %v259_v9  ;;  %v299_v13 = vadd.f32 %v298_v10, %v284_v8 }
 0x117   :  { %v261_v14 = vrot.slane %v260_v12, 4  ;;  %v300_v15 = vadd.f32 %v299_v13, %v285_v11 }
 0x119   :  { %v262_v16 = vadd.f32 %v261_v14, %v260_v12  ;;  %v301_v17 = vrot.slane %v300_v15, 4 }
 0x11b   :  { %v263_v18 = vrot.slane %v262_v16, 2  ;;  %v302_v19 = vadd.f32 %v301_v17, %v300_v15 }
 0x11d   :  { %v264_v20 = vadd.f32 %v263_v18, %v262_v16  ;;  %v303_v21 = vrot.slane %v302_v19, 2 }
 0x11f   :  { %v265_v22 = vrot.slane %v264_v20, 1  ;;  %v304_v23 = vadd.f32 %v303_v21, %v302_v19 }
 0x121   :  { %v266_v25 = vadd.f32 %v265_v22, %v264_v20  ;;  %v305_v26 = vrot.slane %v304_v23, 1 }
 0x123   :  { %v267_v28 = vadd.f32 %v266_v25, %v245_v24  ;;  %v306_v29 = vadd.f32 %v305_v26, %v304_v23 }
 0x125   :  { %268 = vst [vmem:[%s503_s2] sm:$0x1] %v267_v28  ;;  %v307_v30 = vadd.f32 %v306_v29, %v269_v27 }
 0x127   :  { %308 = vst [vmem:[%s504_s3] sm:$0x1] %v307_v30 }

// kernel: cnn_block_forward.3
= control target key start
LH: loop header
LB: loop body
LE: loop exit
PB: predicated region body
PF: predicated region fallthrough
CT: control target
= control target key end

     0   :  { %s618_s1 = inlined_call_operand.vmem [shape: bf16[128,128], index: 1, kind: input, shape index: {}]   ;;  %s619_s0 = inlined_call_operand.vmem [shape: bf16[128,128], index: 0, kind: input, shape index: {}]   ;;  %s620_s2 = inlined_call_operand.vmem [shape: f32[1,128], index: 2, kind: input, shape index: {}]   ;;  %s621_s3 = inlined_call_operand.vmem [shape: f32[1,128], index: 3, kind: input, shape index: {}]   ;;  %s622_s4 = inlined_call_operand.vmem [shape: f32[128,128], index: 4, kind: output, shape index: {}]  }
   0x1   :  { %v439_v0 = vld [vmem:[%s618_s1] sm:$0xff]   ;;  %v440_v1 = vld [vmem:[%s618_s1 + $0x8] sm:$0xff]   ;;  %v441_v2 = vld [vmem:[%s618_s1 + $0x10] sm:$0xff]  }
   0x2   :  { %391 = vmatprep.subr.bf16.mxu0 %v439_v0  ;;  %423 = vmatprep.subr.bf16.mxu1 %v439_v0  ;;  %v442_v3 = vld [vmem:[%s618_s1 + $0x18] sm:$0xff]   ;;  %v447_v4 = vld [vmem:[%s619_s0] sm:$0xff]   ;;  %v444_v7 = vld [vmem:[%s618_s1 + $0x28] sm:$0xff]  }
   0x3   :  { %392 = vmatpush3.bf16.msra.mxu0 %v439_v0  ;;  %431 = vmatpush3.bf16.msra.mxu1 %v439_v0  ;;  %v448_v5 = vld [vmem:[%s619_s0 + $0x20] sm:$0xff]   ;;  %v445_v8 = vld [vmem:[%s618_s1 + $0x30] sm:$0xff]   ;;  %v446_v9 = vld [vmem:[%s618_s1 + $0x38] sm:$0xff]  }
   0x4   :  { %393 = vmatprep.subr.bf16.mxu0 %v440_v1  ;;  %424 = vmatprep.subr.bf16.mxu1 %v440_v1  ;;  %v443_v6 = vld [vmem:[%s618_s1 + $0x20] sm:$0xff]   ;;  %v449_v10 = vld [vmem:[%s619_s0 + $0x8] sm:$0xff]   ;;  %v451_v12 = vld [vmem:[%s619_s0 + $0x10] sm:$0xff]  }
   0x5   :  { %407 = vmatprep.mubr.bf16.mxu0 %v447_v4  ;;  %415 = vmatprep.mubr.bf16.mxu1 %v448_v5  ;;  %v450_v11 = vld [vmem:[%s619_s0 + $0x28] sm:$0xff]   ;;  %v452_v13 = vld [vmem:[%s619_s0 + $0x30] sm:$0xff]   ;;  %v453_v14 = vld [vmem:[%s619_s0 + $0x18] sm:$0xff]  }
   0x6   :  { %v454_v15 = vld [vmem:[%s619_s0 + $0x38] sm:$0xff]   ;;  %v531_v16 = vld [vmem:[%s620_s2] ss:$0 sm:$0xff] }
   0x7   :  { %394 = vmatpush3.bf16.msra.mxu0 %v440_v1  ;;  %432 = vmatpush3.bf16.msra.mxu1 %v440_v1  ;;  %v536_v18 = vld [vmem:[%s621_s3] ss:$0 sm:$0xff] }
   0x8   :  { %395 = vmatprep.subr.bf16.mxu0 %v441_v2  ;;  %425 = vmatprep.subr.bf16.mxu1 %v441_v2 }
   0xb   :  { %396 = vmatpush3.bf16.msra.mxu0 %v441_v2  ;;  %433 = vmatpush3.bf16.msra.mxu1 %v441_v2 }
   0xc   :  { %397 = vmatprep.subr.bf16.mxu0 %v442_v3  ;;  %426 = vmatprep.subr.bf16.mxu1 %v442_v3 }
   0xf   :  { %398 = vmatpush3.bf16.msra.mxu0 %v442_v3  ;;  %434 = vmatpush3.bf16.msra.mxu1 %v442_v3 }
  0x10   :  { %399 = vmatprep.subr.bf16.mxu0 %v443_v6  ;;  %427 = vmatprep.subr.bf16.mxu1 %v443_v6 }
  0x13   :  { %400 = vmatpush3.bf16.msra.mxu0 %v443_v6  ;;  %435 = vmatpush3.bf16.msra.mxu1 %v443_v6 }
  0x14   :  { %401 = vmatprep.subr.bf16.mxu0 %v444_v7  ;;  %428 = vmatprep.subr.bf16.mxu1 %v444_v7 }
  0x17   :  { %402 = vmatpush3.bf16.msra.mxu0 %v444_v7  ;;  %436 = vmatpush3.bf16.msra.mxu1 %v444_v7 }
  0x18   :  { %403 = vmatprep.subr.bf16.mxu0 %v445_v8  ;;  %429 = vmatprep.subr.bf16.mxu1 %v445_v8 }
  0x1b   :  { %404 = vmatpush3.bf16.msra.mxu0 %v445_v8  ;;  %437 = vmatpush3.bf16.msra.mxu1 %v445_v8 }
  0x1c   :  { %405 = vmatprep.subr.bf16.mxu0 %v446_v9  ;;  %430 = vmatprep.subr.bf16.mxu1 %v446_v9 }
  0x1f   :  { %406 = vmatpush3.bf16.msra.mxu0 %v446_v9  ;;  %438 = vmatpush3.bf16.msra.mxu1 %v446_v9 }
  0x22   :  { %408 = vmatmul.mubr.bf16.vlgmr.msra.gmra.mrb[0].mxu0 %v449_v10  ;;  %416 = vmatmul.mubr.bf16.vlgmr.msra.gmra.mrb[0].mxu1 %v450_v11 }
  0x23   :  { %411 = vmatprep.mubr.bf16.mxu0 %v451_v12  ;;  %419 = vmatprep.mubr.bf16.mxu1 %v452_v13 }
  0x2a   :  { %412 = vmatmul.mubr.bf16.gmra.mrb[4].mxu0 %v453_v14  ;;  %420 = vmatmul.mubr.bf16.gmra.mrb[4].mxu1 %v454_v15 }
  0xf5   :  { %v409_v17 = vpop.f32.mrb[0].mxu0  ;;  %v417_v19 = vpop.f32.mrb[0].mxu1 }
  0xf6   :  { %v252_v20 = vmul.f32 %v409_v17, %v531_v16  ;;  %v260_v21 = vmul.f32 %v417_v19, %v531_v16  ;;  %v180_v22 = vpop.f32.mrb[1].mxu0  ;;  %v212_v23 = vpop.f32.mrb[1].mxu1 }
  0xf7   :  { %v250_v24 = vmul.f32 %v531_v16, %v180_v22  ;;  %v258_v25 = vmul.f32 %v531_v16, %v212_v23  ;;  %v410_v26 = vpop.f32.mrb[2].mxu0  ;;  %v418_v27 = vpop.f32.mrb[2].mxu1 }
  0xf8   :  { %v275_v28 = vadd.f32 %v536_v18, %v252_v20  ;;  %v283_v29 = vadd.f32 %v536_v18, %v260_v21  ;;  %v253_v30 = vmul.f32 %v410_v26, %v531_v16  ;;  %v261_v31 = vmul.f32 %v418_v27, %v531_v16  ;;  %v183_v32 = vpop.f32.mrb[3].mxu0  ;;  %v215_v33 = vpop.f32.mrb[3].mxu1 }
  0xf9   :  { %v273_v34 = vadd.f32 %v536_v18, %v250_v24  ;;  %v281_v35 = vadd.f32 %v536_v18, %v258_v25  ;;  %v251_v36 = vmul.f32 %v531_v16, %v183_v32  ;;  %v259_v37 = vmul.f32 %v531_v16, %v215_v33 }
  0xfa   :  { %vm291_vm0 = vcmp.ge.f32.partialorder %v275_v28, 0.0  ;;  %v307_v38 = vmul.f32 0.2, %v275_v28  ;;  %vm299_vm1 = vcmp.ge.f32.partialorder %v283_v29, 0.0  ;;  %v315_v39 = vmul.f32 0.2, %v283_v29 }
  0xfb   :  { %vm289_vm2 = vcmp.ge.f32.partialorder %v273_v34, 0.0  ;;  %v305_v40 = vmul.f32 0.2, %v273_v34  ;;  %vm297_vm3 = vcmp.ge.f32.partialorder %v281_v35, 0.0  ;;  %v313_v41 = vmul.f32 0.2, %v281_v35 }
  0xfc   :  { %v323_v42 = vsel %vm291_vm0, %v275_v28, %v307_v38  ;;  %v331_v43 = vsel %vm299_vm1, %v283_v29, %v315_v39  ;;  %v276_v44 = vadd.f32 %v536_v18, %v253_v30  ;;  %v284_v45 = vadd.f32 %v536_v18, %v261_v31 }
  0xfd   :  { %339 = vst [vmem:[%s622_s4 + $0x10] sm:$0xff] %v323_v42  ;;  %347 = vst [vmem:[%s622_s4 + $0x50] sm:$0xff] %v331_v43  ;;  %v321_v46 = vsel %vm289_vm2, %v273_v34, %v305_v40  ;;  %v329_v47 = vsel %vm297_vm3, %v281_v35, %v313_v41  ;;  %v274_v48 = vadd.f32 %v536_v18, %v251_v36  ;;  %v413_v50 = vpop.f32.mrb[4].mxu0  ;;  %v421_v51 = vpop.f32.mrb[4].mxu1 }
  0xfe   :  { %v282_v49 = vadd.f32 %v536_v18, %v259_v37  ;;  %337 = vst [vmem:[%s622_s4] sm:$0xff] %v321_v46  ;;  %345 = vst [vmem:[%s622_s4 + $0x40] sm:$0xff] %v329_v47  ;;  %vm292_vm4 = vcmp.ge.f32.partialorder %v276_v44, 0.0  ;;  %v308_v52 = vmul.f32 0.2, %v276_v44  ;;  %vm300_vm5 = vcmp.ge.f32.partialorder %v284_v45, 0.0  ;;  %v196_v60 = vpop.f32.mrb[5].mxu0 }
  0xff   :  { %v316_v53 = vmul.f32 0.2, %v284_v45  ;;  %vm290_vm6 = vcmp.ge.f32.partialorder %v274_v48, 0.0  ;;  %v306_v54 = vmul.f32 0.2, %v274_v48  ;;  %v256_v58 = vmul.f32 %v413_v50, %v531_v16  ;;  %v228_v61 = vpop.f32.mrb[5].mxu1 }
 0x100   :  { %vm298_vm7 = vcmp.ge.f32.partialorder %v282_v49, 0.0  ;;  %v314_v55 = vmul.f32 0.2, %v282_v49  ;;  %v324_v56 = vsel %vm292_vm4, %v276_v44, %v308_v52  ;;  %v264_v59 = vmul.f32 %v421_v51, %v531_v16  ;;  %v414_v2 = vpop.f32.mrb[6].mxu0  ;;  %v422_v3 = vpop.f32.mrb[6].mxu1 }
 0x101   :  { %v332_v57 = vsel %vm300_vm5, %v284_v45, %v316_v53  ;;  %340 = vst [vmem:[%s622_s4 + $0x18] sm:$0xff] %v324_v56  ;;  %v322_v62 = vsel %vm290_vm6, %v274_v48, %v306_v54  ;;  %v254_v0 = vmul.f32 %v531_v16, %v196_v60  ;;  %v262_v1 = vmul.f32 %v531_v16, %v228_v61  ;;  %v199_v8 = vpop.f32.mrb[7].mxu0  ;;  %v231_v9 = vpop.f32.mrb[7].mxu1 }
 0x102   :  { %348 = vst [vmem:[%s622_s4 + $0x58] sm:$0xff] %v332_v57  ;;  %v330_v63 = vsel %vm298_vm7, %v282_v49, %v314_v55  ;;  %338 = vst [vmem:[%s622_s4 + $0x8] sm:$0xff] %v322_v62  ;;  %v279_v4 = vadd.f32 %v536_v18, %v256_v58  ;;  %v287_v5 = vadd.f32 %v536_v18, %v264_v59 }
 0x103   :  { %346 = vst [vmem:[%s622_s4 + $0x48] sm:$0xff] %v330_v63  ;;  %v257_v6 = vmul.f32 %v414_v2, %v531_v16  ;;  %v265_v7 = vmul.f32 %v422_v3, %v531_v16  ;;  %v277_v10 = vadd.f32 %v536_v18, %v254_v0  ;;  %v285_v11 = vadd.f32 %v536_v18, %v262_v1 }
 0x104   :  { %v255_v12 = vmul.f32 %v531_v16, %v199_v8  ;;  %v263_v13 = vmul.f32 %v531_v16, %v231_v9  ;;  %vm295_vm8 = vcmp.ge.f32.partialorder %v279_v4, 0.0  ;;  %v311_v14 = vmul.f32 0.2, %v279_v4 }
 0x105   :  { %vm303_vm9 = vcmp.ge.f32.partialorder %v287_v5, 0.0  ;;  %v319_v15 = vmul.f32 0.2, %v287_v5  ;;  %vm293_vm10 = vcmp.ge.f32.partialorder %v277_v10, 0.0  ;;  %v309_v17 = vmul.f32 0.2, %v277_v10 }
 0x106   :  { %vm301_vm11 = vcmp.ge.f32.partialorder %v285_v11, 0.0  ;;  %v317_v19 = vmul.f32 0.2, %v285_v11  ;;  %v327_v20 = vsel %vm295_vm8, %v279_v4, %v311_v14  ;;  %v280_v22 = vadd.f32 %v536_v18, %v257_v6 }
 0x107   :  { %v335_v21 = vsel %vm303_vm9, %v287_v5, %v319_v15  ;;  %v288_v23 = vadd.f32 %v536_v18, %v265_v7  ;;  %343 = vst [vmem:[%s622_s4 + $0x30] sm:$0xff] %v327_v20  ;;  %v325_v16 = vsel %vm293_vm10, %v277_v10, %v309_v17  ;;  %v278_v25 = vadd.f32 %v536_v18, %v255_v12 }
 0x108   :  { %351 = vst [vmem:[%s622_s4 + $0x70] sm:$0xff] %v335_v21  ;;  %v333_v24 = vsel %vm301_vm11, %v285_v11, %v317_v19  ;;  %v286_v26 = vadd.f32 %v536_v18, %v263_v13  ;;  %341 = vst [vmem:[%s622_s4 + $0x20] sm:$0xff] %v325_v16  ;;  %vm296_vm12 = vcmp.ge.f32.partialorder %v280_v22, 0.0  ;;  %v312_v27 = vmul.f32 0.2, %v280_v22 }
 0x109   :  { %349 = vst [vmem:[%s622_s4 + $0x60] sm:$0xff] %v333_v24  ;;  %vm304_vm13 = vcmp.ge.f32.partialorder %v288_v23, 0.0  ;;  %v320_v28 = vmul.f32 0.2, %v288_v23  ;;  %vm294_vm14 = vcmp.ge.f32.partialorder %v278_v25, 0.0 }
 0x10a   :  { %v310_v29 = vmul.f32 0.2, %v278_v25  ;;  %vm302_vm15 = vcmp.ge.f32.partialorder %v286_v26, 0.0  ;;  %v318_v30 = vmul.f32 0.2, %v286_v26  ;;  %v328_v31 = vsel %vm296_vm12, %v280_v22, %v312_v27 }
 0x10b   :  { %v336_v32 = vsel %vm304_vm13, %v288_v23, %v320_v28  ;;  %344 = vst [vmem:[%s622_s4 + $0x38] sm:$0xff] %v328_v31 }
 0x10c   :  { %352 = vst [vmem:[%s622_s4 + $0x78] sm:$0xff] %v336_v32  ;;  %v326_v18 = vsel %vm294_vm14, %v278_v25, %v310_v29  ;;  %v334_v33 = vsel %vm302_vm15, %v286_v26, %v318_v30 }
 0x10d   :  { %342 = vst [vmem:[%s622_s4 + $0x28] sm:$0xff] %v326_v18  ;;  %350 = vst [vmem:[%s622_s4 + $0x68] sm:$0xff] %v334_v33 }

</bundles_post_ra>
